<compile_context>
chip_gen: v7x
topology: tpu7x:2x2x1
jax: 0.10.0
libtpu: 0.0.40
codegen_flags: <defaults>
</compile_context>

<pallas_src>
import math
from functools import partial

import jax
import jax.numpy as jnp
from jax.experimental import pallas as pl
from jax.experimental.pallas import tpu as pltpu


def _round_up(x, m):
    return (x + m - 1) // m * m


def _choose_batch_tile(B):
    """Pick a batch tile.

    For realistic batches pick the largest multiple-of-16 tile that still gives
    >= 2 grid steps along the batch axis (so v7x's two TensorCores both engage
    and DMA pipelines).  Tiny batches use one full block (block dim == full
    array dim is always legal).
    """
    if B >= 16:
        for tb in (256, 128, 64, 32, 16, 8):
            if B % tb == 0 and B // tb >= 2:
                return tb
    return B


def _choose_n_tile(Np):
    """Largest lane-dense N tile that divides the padded class count."""
    for tn in (512, 256, 128):
        if Np % tn == 0:
            return tn
    return Np  # Np is always a multiple of 128, so this is unreachable


def linear_head_kernel(x_ref, w_ref, b_ref, o_ref):
    # x_ref: (TB, F) f32   w_ref: (F, TN) bf16   b_ref: (1, TN) f32   o_ref: (TB, TN) f32
    # Cast activations to bf16 in-kernel (VPU is idle here); accumulate in f32.
    acc = jnp.dot(x_ref[...].astype(jnp.bfloat16), w_ref[...],
                  preferred_element_type=jnp.float32)
    o_ref[...] = (acc + b_ref[...]).astype(o_ref.dtype)


def pack_fc_params(fc_weight, fc_bias, lane=128):
    """One-time packing of nn.Linear params for the kernel.

    fc_weight: (num_class, 2048) PyTorch layout (out, in)
    fc_bias:   (num_class,)
    returns:   w_packed (2048, Np) bf16, b_packed (1, Np) f32   with Np = round_up(N, 128)

    NOTE: correctness of the padded-N path relies on the weight AND bias padding
    being zeros, plus the final slice in net_forward.
    """
    N, F = fc_weight.shape
    Np = _round_up(N, lane)
    w_packed = jnp.pad(fc_weight.T.astype(jnp.bfloat16), ((0, 0), (0, Np - N)))
    b_packed = jnp.pad(fc_bias.astype(jnp.float32).reshape(1, N), ((0, 0), (0, Np - N)))
    return w_packed, b_packed


@partial(jax.jit, static_argnames=("num_class",))
def net_forward(x_nchw, w_packed, b_packed, num_class):
    """Forward pass of Net (head only; backbone output is the input).

    x_nchw:   (B, C, H, W) backbone output (C*H*W == 2048).
    w_packed: (2048, Np) bf16, pre-packed with pack_fc_params.
    b_packed: (1, Np) f32.
    returns:  (B, num_class) f32 logits.
    """
    B = x_nchw.shape[0]
    # torch.flatten(x, start_dim=1) -- metadata-only reshape for (B, C, 1, 1).
    feat = x_nchw.reshape(B, -1)                              # (B, F) f32
    F = feat.shape[1]
    Np = w_packed.shape[1]
    if F != w_packed.shape[0]:
        raise ValueError(
            f"Backbone feature size C*H*W={F} does not match fc in_features="
            f"{w_packed.shape[0]}")

    TN = _choose_n_tile(Np)
    TB = _choose_batch_tile(B)
    n_b = B // TB
    n_n = Np // TN

    feat_bytes = B * F * 4          # f32 activations
    w_bytes = F * Np * 2            # bf16 weights
    out_bytes = B * Np * 4

    # Loop-order selection: the operand whose block index is constant along the
    # INNER grid axis is fetched only once.  Put the larger re-stream on the
    # axis where it is NOT re-streamed.
    n_outer = w_bytes * (n_b - 1) > feat_bytes * (n_n - 1)
    if n_outer:
        # grid = (N tiles, B tiles): weight block (0, j) constant across inner
        # batch steps -> weight streamed from HBM exactly once.
        grid = (n_n, n_b)
        x_spec = pl.BlockSpec((TB, F), lambda j, i: (i, 0))
        w_spec = pl.BlockSpec((F, TN), lambda j, i: (0, j))
        b_spec = pl.BlockSpec((1, TN), lambda j, i: (0, j))
        o_spec = pl.BlockSpec((TB, TN), lambda j, i: (i, j))
    else:
        # grid = (B tiles, N tiles): feature block (i, 0) constant across inner
        # N steps -> features streamed from HBM exactly once.
        grid = (n_b, n_n)
        x_spec = pl.BlockSpec((TB, F), lambda i, j: (i, 0))
        w_spec = pl.BlockSpec((F, TN), lambda i, j: (0, j))
        b_spec = pl.BlockSpec((1, TN), lambda i, j: (0, j))
        o_spec = pl.BlockSpec((TB, TN), lambda i, j: (i, j))

    out_p = pl.pallas_call(
        linear_head_kernel,
        out_shape=jax.ShapeDtypeStruct((B, Np), jnp.float32),
        grid_spec=pltpu.PrefetchScalarGridSpec(
            num_scalar_prefetch=0,
            grid=grid,
            in_specs=[x_spec, w_spec, b_spec],
            out_specs=o_spec,
        ),
        compiler_params=pltpu.CompilerParams(
            dimension_semantics=("parallel", "parallel"),
        ),
        cost_estimate=pl.CostEstimate(
            flops=2 * B * F * Np,
            bytes_accessed=feat_bytes + w_bytes + out_bytes,
            transcendentals=0,
        ),
    )(feat, w_packed, b_packed)

    return out_p[:, :num_class]


def init_fc_params(key, num_class, in_features=2048, dtype=jnp.float32):
    """Deterministic init matching nn.Linear's default (uniform +/- 1/sqrt(in))."""
    kw, kb = jax.random.split(key)
    bound = 1.0 / math.sqrt(in_features)
    weight = jax.random.uniform(kw, (num_class, in_features), dtype,
                                minval=-bound, maxval=bound)
    bias = jax.random.uniform(kb, (num_class,), dtype,
                              minval=-bound, maxval=bound)
    return weight, bias


if __name__ == "__main__":
    key = jax.random.PRNGKey(0)
    k_x, k_p, k_x2, k_p2 = jax.random.split(key, 4)

    # Case 1: tiny batch, small class count (single-block path).
    num_class = 10
    B = 2
    # Backbone pooled output: NCHW (B, 2048, 1, 1) -> flatten gives 2048 features.
    x = jax.random.normal(k_x, (B, 2048, 1, 1), dtype=jnp.float32)
    fc_w, fc_b = init_fc_params(k_p, num_class)
    w_packed, b_packed = pack_fc_params(fc_w, fc_b)   # one-time packing

    out = net_forward(x, w_packed, b_packed, num_class)
    out = jax.block_until_ready(out)

    ref = x.reshape(B, -1) @ fc_w.T + fc_b
    assert out.shape == (B, num_class)
    assert jnp.allclose(out, ref, atol=2e-2, rtol=2e-2)

    # Case 2: multi-tile path (batch and N tiling, loop-order selection).
    num_class2 = 200
    B2 = 32
    x2 = jax.random.normal(k_x2, (B2, 2048, 1, 1), dtype=jnp.float32)
    fc_w2, fc_b2 = init_fc_params(k_p2, num_class2)
    w_packed2, b_packed2 = pack_fc_params(fc_w2, fc_b2)

    out2 = net_forward(x2, w_packed2, b_packed2, num_class2)
    out2 = jax.block_until_ready(out2)

    ref2 = x2.reshape(B2, -1) @ fc_w2.T + fc_b2
    assert out2.shape == (B2, num_class2)
    assert jnp.allclose(out2, ref2, atol=2e-2, rtol=2e-2)

    print("KERNEL_OK")
</pallas_src>

<mosaic_0001>
module attributes {stable_mosaic.version = 11 : i64} {
  func.func @linear_head_kernel(%arg0: i32, %arg1: i32, %arg2: memref<2x2048xf32, #tpu.memory_space<vmem>>, %arg3: memref<2048x128xbf16, #tpu.memory_space<vmem>>, %arg4: memref<1x128xf32, #tpu.memory_space<vmem>>, %arg5: memref<2x128xf32, #tpu.memory_space<vmem>>) attributes {dimension_semantics = [#tpu.dimension_semantics<parallel>, #tpu.dimension_semantics<parallel>], iteration_bounds = array<i64: 1, 1>, scalar_prefetch = 0 : i64, scratch_operands = 0 : i64, tpu.core_type = #tpu.core_type<tc>, window_params = [{transform_indices = @transform_0, window_bounds = array<i64: 2, 2048>}, {transform_indices = @transform_1, window_bounds = array<i64: 2048, 128>}, {transform_indices = @transform_2, window_bounds = array<i64: 1, 128>}, {transform_indices = @transform_3, window_bounds = array<i64: 2, 128>}]} {
    %c0 = arith.constant 0 : index
    %c0_0 = arith.constant 0 : index
    %0 = vector.load %arg2[%c0, %c0_0] : memref<2x2048xf32, #tpu.memory_space<vmem>>, vector<2x2048xf32>
    %1 = arith.truncf %0 : vector<2x2048xf32> to vector<2x2048xbf16>
    %c0_1 = arith.constant 0 : index
    %c0_2 = arith.constant 0 : index
    %2 = vector.load %arg3[%c0_1, %c0_2] : memref<2048x128xbf16, #tpu.memory_space<vmem>>, vector<2048x128xbf16>
    %cst = arith.constant dense<0.000000e+00> : vector<2x128xf32>
    %3 = tpu.matmul %1, %2, %cst {dimension_numbers = #tpu.dot_dimension_numbers<[1], [0], [0], [1], [0, 0, 1, 1], [], []>} : vector<2x2048xbf16>, vector<2048x128xbf16>, vector<2x128xf32> -> vector<2x128xf32>
    %c0_3 = arith.constant 0 : index
    %c0_4 = arith.constant 0 : index
    %4 = vector.load %arg4[%c0_3, %c0_4] : memref<1x128xf32, #tpu.memory_space<vmem>>, vector<1x128xf32>
    %5 = vector.broadcast %4 : vector<1x128xf32> to vector<2x128xf32>
    %6 = arith.addf %3, %5 : vector<2x128xf32>
    %c0_5 = arith.constant 0 : index
    %c0_6 = arith.constant 0 : index
    %7 = vector.load %arg5[%c0_5, %c0_6] : memref<2x128xf32, #tpu.memory_space<vmem>>, vector<2x128xf32>
    tpu.vector_store %arg5[%c0_5, %c0_6], %6 {strides = array<i32>} : memref<2x128xf32, #tpu.memory_space<vmem>>, vector<2x128xf32>,
    return
  }
  func.func @transform_0(%arg0: i32, %arg1: i32) -> (i32, i32) {
    %c0_i32 = arith.constant 0 : i32
    %c0_i32_0 = arith.constant 0 : i32
    return %arg0, %c0_i32 : i32, i32
  }
  func.func @transform_1(%arg0: i32, %arg1: i32) -> (i32, i32) {
    %c0_i32 = arith.constant 0 : i32
    %c0_i32_0 = arith.constant 0 : i32
    return %c0_i32, %arg1 : i32, i32
  }
  func.func @transform_2(%arg0: i32, %arg1: i32) -> (i32, i32) {
    %c0_i32 = arith.constant 0 : i32
    %c0_i32_0 = arith.constant 0 : i32
    return %c0_i32, %arg1 : i32, i32
  }
  func.func @transform_3(%arg0: i32, %arg1: i32) -> (i32, i32) {
    %c0_i32 = arith.constant 0 : i32
    return %arg0, %arg1 : i32, i32
  }
}

</mosaic_0001>

<bundles_post_ra>
// kernel: net_forward.1
= control target key start
LH: loop header
LB: loop body
LE: loop exit
PB: predicated region body
PF: predicated region fallthrough
CT: control target
= control target key end

     0   :  { %8 = vsyncpa [#allocation3], 0  ;;  %s2069_s0 = inlined_call_operand.vmem [shape: f32[2,2048], index: 0, kind: input, shape index: {}]   ;;  %s2070_s1 = inlined_call_operand.hbm [shape: bf16[2048,128], index: 1, kind: input, shape index: {}]   ;;  %s2071_s2 = inlined_call_operand.vmem [shape: f32[1,128], index: 2, kind: input, shape index: {}]   ;;  %s2072_s3 = inlined_call_operand.hbm [shape: f32[2,128], index: 3, kind: output, shape index: {}]  }
   0x1   :  { %9 = vsyncpa [#allocation4], 0  ;;  %s1995_s12 = smov [#allocation2]   ;;  %s1947_s16 = scalar_lea.hbm %s2070_s1, 16384 }
   0x2   :  { %s17_s13 = sshll.u32 %s1995_s12, 4  ;;  %p1948_p0 = scmp.ne.s32.totalorder %s2070_s1, %s1947_s16  ;;  %s18_s13 = int_to_ptr.vmem [resolvable:$true] %s17_s13 }
   0x3   :  { %p1951_p1 = scmp.lt.u32.totalorder %s1947_s16, %s2070_s1 }
   0x5   :  { %p1953_p2 = pnand %p1951_p1, %p1948_p0 }
   0x7   :  { %1956 = shalt.err (!%p1953_p2)
}
   0x8   :  { %s1957_s21 = scalar_lea.vmem %s18_s13, 16384  ;;  %p1962_p4 = scmp.lt.s32.totalorder %s18_s13, %s18_s13 }
   0x9   :  { %p1958_p3 = scmp.ne.s32.totalorder %s18_s13, %s1957_s21  ;;  %p1963_p5 = scmp.lt.s32.totalorder %s1957_s21, %s1957_s21 }
   0xb   :  { %p1964_p6 = por %p1963_p5, %p1962_p4 }
   0xd   :  { %p1965_p7 = pnand %p1964_p6, %p1958_p3 }
   0xf   :  { %1968 = shalt.err (!%p1965_p7)
}
  0x10   :  { %s1996_s22 = smov 64   ;;  %s1997_s23 = smov 4  }
  0x11   :  { %23 = dma.hbm_to_vmem [thread:$0]  %s2070_s1, 16384, %s18_s13, [#allocation3], %s1996_s22, %s1996_s22, %s1997_s23  }
  0x12   :  { %1991 = dma.done.wait [#allocation3], 16384  }
  0x13   :  { %1992 = vsyncadd [#allocation3], 4294950912  ;;  %v1815_v0 = vld [vmem:[#allocation2 + $0x40] sm:$0xff]   ;;  %v1819_v4 = vld [vmem:[#allocation2 + $0x48] sm:$0xff]   ;;  %v1998_v22 = vmov 1983009808   ;;  %v42_v24 = vlaneseq }
  0x14   :  { %v1816_v1 = vld [vmem:[#allocation2 + $0xc0] sm:$0xff]   ;;  %1634 = vmatprep.subr.bf16.mxu0 %v1815_v0  ;;  %v1820_v5 = vld [vmem:[#allocation2 + $0xc8] sm:$0xff]   ;;  %v1823_v8 = vld [vmem:[#allocation2 + $0x50] sm:$0xff]   ;;  %v40_v23 = vunpack.c.l.s4 %v1998_v22 }
  0x15   :  { %v1817_v2 = vld [vmem:[#allocation2] sm:$0xff]   ;;  %1656 = vmatprep.subr.bf16.mxu1 %v1816_v1  ;;  %v1821_v6 = vld [vmem:[#allocation2 + $0x8] sm:$0xff]   ;;  %v1824_v9 = vld [vmem:[#allocation2 + $0xd0] sm:$0xff]   ;;  %v43_v30 = vshrl.u32 %v42_v24, 7 }
  0x16   :  { %v1818_v3 = vld [vmem:[#allocation2 + $0x80] sm:$0xff]   ;;  %1635 = vmatpush3.bf16.msra.mxu0 %v1817_v2  ;;  %v1822_v7 = vld [vmem:[#allocation2 + $0x88] sm:$0xff]   ;;  %v1825_v10 = vld [vmem:[#allocation2 + $0x10] sm:$0xff]   ;;  %v41_v29 = vunpack.c.0.s8 %v40_v23 }
  0x17   :  { %1657 = vmatpush3.bf16.msra.mxu1 %v1818_v3  ;;  %1636 = vmatprep.subr.bf16.mxu0 %v1819_v4  ;;  %v1826_v11 = vld [vmem:[#allocation2 + $0x90] sm:$0xff]   ;;  %v1827_v12 = vld [vmem:[#allocation2 + $0x58] sm:$0xff]   ;;  %v1831_v16 = vld [vmem:[#allocation2 + $0x60] sm:$0xff]  }
  0x18   :  { %1658 = vmatprep.subr.bf16.mxu1 %v1820_v5  ;;  %v1828_v13 = vld [vmem:[#allocation2 + $0xd8] sm:$0xff]   ;;  %v1832_v17 = vld [vmem:[#allocation2 + $0xe0] sm:$0xff]   ;;  %v1835_v20 = vld [vmem:[#allocation2 + $0x68] sm:$0xff]   ;;  %v2032_v35 = vsub.s32 %v41_v29, %v43_v30 }
  0x19   :  { %v1829_v14 = vld [vmem:[#allocation2 + $0x18] sm:$0xff]   ;;  %v1833_v18 = vld [vmem:[#allocation2 + $0x20] sm:$0xff]   ;;  %v1836_v21 = vld [vmem:[#allocation2 + $0xe8] sm:$0xff]  }
  0x1a   :  { %1637 = vmatpush3.bf16.msra.mxu0 %v1821_v6  ;;  %v1830_v15 = vld [vmem:[#allocation2 + $0x98] sm:$0xff]   ;;  %v1834_v19 = vld [vmem:[#allocation2 + $0xa0] sm:$0xff]   ;;  %v1837_v25 = vld [vmem:[#allocation2 + $0x28] sm:$0xff]  }
  0x1b   :  { %1659 = vmatpush3.bf16.msra.mxu1 %v1822_v7  ;;  %1638 = vmatprep.subr.bf16.mxu0 %v1823_v8  ;;  %v1838_v26 = vld [vmem:[#allocation2 + $0xa8] sm:$0xff]   ;;  %v1839_v27 = vld [vmem:[#allocation2 + $0x70] sm:$0xff]   ;;  %v1843_v33 = vld [vmem:[#allocation2 + $0x78] sm:$0xff]  }
  0x1c   :  { %1660 = vmatprep.subr.bf16.mxu1 %v1824_v9  ;;  %v1840_v28 = vld [vmem:[#allocation2 + $0xf0] sm:$0xff]   ;;  %v1844_v34 = vld [vmem:[#allocation2 + $0xf8] sm:$0xff]   ;;  %v30_v38 = vld [vmem:[%s2069_s0] sm:$0xff] }
  0x1d   :  { %v1841_v31 = vld [vmem:[#allocation2 + $0x30] sm:$0xff]   ;;  %v1845_v36 = vld [vmem:[#allocation2 + $0x38] sm:$0xff]   ;;  %v45_v39 = vrot.slane %v30_v38, %v2032_v35  ;;  %v38_v40 = vcombine.high %v30_v38, %v30_v38  ;;  %v1848_v41 = vld [vmem:[#allocation2 + $0x140] sm:$0xff]  }
  0x1e   :  { %1639 = vmatpush3.bf16.msra.mxu0 %v1825_v10  ;;  %v1842_v32 = vld [vmem:[#allocation2 + $0xb0] sm:$0xff]   ;;  %v1846_v37 = vld [vmem:[#allocation2 + $0xb8] sm:$0xff]   ;;  %v1849_v42 = vld [vmem:[#allocation2 + $0x1c0] sm:$0xff]  }
  0x1f   :  { %1661 = vmatpush3.bf16.msra.mxu1 %v1826_v11  ;;  %1640 = vmatprep.subr.bf16.mxu0 %v1827_v12  ;;  %v53_v43 = vcombine.high %v45_v39, %v45_v39  ;;  %v52_v44 = vrot.slane %v38_v40, %v2032_v35  ;;  %v122_v45 = vpack.c.bf16 %v45_v39, %v45_v39  ;;  %v1850_v48 = vld [vmem:[#allocation2 + $0x100] sm:$0xff]   ;;  %v1852_v50 = vld [vmem:[#allocation2 + $0x148] sm:$0xff]   ;;  %v1856_v55 = vld [vmem:[#allocation2 + $0x150] sm:$0xff]  }
  0x20   :  { %1662 = vmatprep.subr.bf16.mxu1 %v1828_v13  ;;  %v1851_v52 = vld [vmem:[#allocation2 + $0x180] sm:$0xff]   ;;  %v1853_v53 = vld [vmem:[#allocation2 + $0x1c8] sm:$0xff]   ;;  %v1857_v57 = vld [vmem:[#allocation2 + $0x1d0] sm:$0xff]  }
  0x21   :  { %v123_v46 = vpack.c.bf16 %v53_v43, %v53_v43  ;;  %v54_v47 = vcombine.high %v52_v44, %v52_v44  ;;  %v124_v49 = vpack.c.bf16 %v52_v44, %v52_v44  ;;  %v1854_v54 = vld [vmem:[#allocation2 + $0x108] sm:$0xff]   ;;  %v1858_v58 = vld [vmem:[#allocation2 + $0x110] sm:$0xff]   ;;  %v1860_v59 = vld [vmem:[#allocation2 + $0x158] sm:$0xff]  }
  0x22   :  { %1641 = vmatpush3.bf16.msra.mxu0 %v1829_v14  ;;  %v1855_v56 = vld [vmem:[#allocation2 + $0x188] sm:$0xff]   ;;  %v1859_v60 = vld [vmem:[#allocation2 + $0x190] sm:$0xff]   ;;  %v1861_v61 = vld [vmem:[#allocation2 + $0x1d8] sm:$0xff]  }
  0x23   :  { %1663 = vmatpush3.bf16.msra.mxu1 %v1830_v15  ;;  %1642 = vmatprep.subr.bf16.mxu0 %v1831_v16  ;;  %v125_v51 = vpack.c.bf16 %v54_v47, %v54_v47  ;;  %v1862_v62 = vld [vmem:[#allocation2 + $0x118] sm:$0xff]   ;;  %v1864_v63 = vld [vmem:[#allocation2 + $0x160] sm:$0xff]   ;;  %v1868_v3 = vld [vmem:[#allocation2 + $0x168] sm:$0xff]  }
  0x24   :  { %1664 = vmatprep.subr.bf16.mxu1 %v1832_v17  ;;  %1201 = vmatprep.mubr.bf16.mxu0 %v123_v46  ;;  %v1863_v0 = vld [vmem:[#allocation2 + $0x198] sm:$0xff]   ;;  %v1865_v1 = vld [vmem:[#allocation2 + $0x1e0] sm:$0xff]   ;;  %v1869_v5 = vld [vmem:[#allocation2 + $0x1e8] sm:$0xff]  }
  0x25   :  { %1241 = vmatprep.mubr.bf16.mxu1 %v125_v51  ;;  %v1866_v2 = vld [vmem:[#allocation2 + $0x120] sm:$0xff]   ;;  %v1870_v6 = vld [vmem:[#allocation2 + $0x128] sm:$0xff]   ;;  %v1872_v7 = vld [vmem:[#allocation2 + $0x170] sm:$0xff]  }
  0x26   :  { %1643 = vmatpush3.bf16.msra.mxu0 %v1833_v18  ;;  %v1867_v4 = vld [vmem:[#allocation2 + $0x1a0] sm:$0xff]   ;;  %v1871_v8 = vld [vmem:[#allocation2 + $0x1a8] sm:$0xff]   ;;  %v1873_v9 = vld [vmem:[#allocation2 + $0x1f0] sm:$0xff]  }
  0x27   :  { %1665 = vmatpush3.bf16.msra.mxu1 %v1834_v19  ;;  %1644 = vmatprep.subr.bf16.mxu0 %v1835_v20  ;;  %v1874_v10 = vld [vmem:[#allocation2 + $0x130] sm:$0xff]   ;;  %v1876_v11 = vld [vmem:[#allocation2 + $0x178] sm:$0xff]   ;;  %v31_v14 = vld [vmem:[%s2069_s0 + $0x8] sm:$0xff] }
  0x28   :  { %1666 = vmatprep.subr.bf16.mxu1 %v1836_v21  ;;  %v1875_v12 = vld [vmem:[#allocation2 + $0x1b0] sm:$0xff]   ;;  %v1877_v13 = vld [vmem:[#allocation2 + $0x1f8] sm:$0xff]   ;;  %v62_v16 = vrot.slane %v31_v14, %v2032_v35  ;;  %v55_v17 = vcombine.high %v31_v14, %v31_v14  ;;  %v1881_v18 = vld [vmem:[#allocation2 + $0x240] sm:$0xff]  }
  0x29   :  { %v1878_v15 = vld [vmem:[#allocation2 + $0x138] sm:$0xff]   ;;  %v1882_v23 = vld [vmem:[#allocation2 + $0x2c0] sm:$0xff]   ;;  %v1892_v39 = vld [vmem:[#allocation2 + $0x290] sm:$0xff]  }
  0x2a   :  { %1645 = vmatpush3.bf16.msra.mxu0 %v1837_v25  ;;  %v1879_v19 = vld [vmem:[#allocation2 + $0x1b8] sm:$0xff]   ;;  %v70_v20 = vcombine.high %v62_v16, %v62_v16  ;;  %v69_v21 = vrot.slane %v55_v17, %v2032_v35  ;;  %v126_v22 = vpack.c.bf16 %v62_v16, %v62_v16  ;;  %v1884_v30 = vld [vmem:[#allocation2 + $0x280] sm:$0xff]   ;;  %v1901_v46 = vld [vmem:[#allocation2 + $0x268] sm:$0xff]  }
  0x2b   :  { %1667 = vmatpush3.bf16.msra.mxu1 %v1838_v26  ;;  %1646 = vmatprep.subr.bf16.mxu0 %v1839_v27  ;;  %v1883_v26 = vld [vmem:[#allocation2 + $0x200] sm:$0xff]   ;;  %v1893_v38 = vld [vmem:[#allocation2 + $0x258] sm:$0xff]   ;;  %v1904_v51 = vld [vmem:[#allocation2 + $0x2a8] sm:$0xff]  }
  0x2c   :  { %1668 = vmatprep.subr.bf16.mxu1 %v1840_v28  ;;  %v127_v24 = vpack.c.bf16 %v70_v20, %v70_v20  ;;  %v71_v25 = vcombine.high %v69_v21, %v69_v21  ;;  %v128_v27 = vpack.c.bf16 %v69_v21, %v69_v21  ;;  %v1885_v28 = vld [vmem:[#allocation2 + $0x248] sm:$0xff]   ;;  %v1894_v40 = vld [vmem:[#allocation2 + $0x2d8] sm:$0xff]   ;;  %v1898_v44 = vld [vmem:[#allocation2 + $0x2e0] sm:$0xff]  }
  0x2d   :  { %v1896_v43 = vld [vmem:[#allocation2 + $0x298] sm:$0xff]   ;;  %v1900_v47 = vld [vmem:[#allocation2 + $0x2a0] sm:$0xff]   ;;  %v1923_v14 = vld [vmem:[#allocation2 + $0x3d0] sm:$0xff]  }
  0x2e   :  { %1647 = vmatpush3.bf16.msra.mxu0 %v1841_v31  ;;  %v129_v29 = vpack.c.bf16 %v71_v25, %v71_v25  ;;  %v1886_v31 = vld [vmem:[#allocation2 + $0x2c8] sm:$0xff]   ;;  %v1926_v16 = vld [vmem:[#allocation2 + $0x358] sm:$0xff]   ;;  %v1925_v17 = vld [vmem:[#allocation2 + $0x390] sm:$0xff]  }
  0x2f   :  { %1669 = vmatpush3.bf16.msra.mxu1 %v1842_v32  ;;  %1648 = vmatprep.subr.bf16.mxu0 %v1843_v33  ;;  %v1887_v32 = vld [vmem:[#allocation2 + $0x208] sm:$0xff]   ;;  %v1889_v33 = vld [vmem:[#allocation2 + $0x250] sm:$0xff]   ;;  %v1930_v20 = vld [vmem:[#allocation2 + $0x360] sm:$0xff]  }
  0x30   :  { %1670 = vmatprep.subr.bf16.mxu1 %v1844_v34  ;;  %v1888_v34 = vld [vmem:[#allocation2 + $0x288] sm:$0xff]   ;;  %v1929_v21 = vld [vmem:[#allocation2 + $0x398] sm:$0xff]   ;;  %v1933_v25 = vld [vmem:[#allocation2 + $0x3a0] sm:$0xff]  }
  0x32   :  { %1649 = vmatpush3.bf16.msra.mxu0 %v1845_v36  ;;  %v1890_v36 = vld [vmem:[#allocation2 + $0x2d0] sm:$0xff]  }
  0x33   :  { %1671 = vmatpush3.bf16.msra.mxu1 %v1846_v37  ;;  %1678 = vmatprep.subr.bf16.mxu0 %v1848_v41  ;;  %v1891_v37 = vld [vmem:[#allocation2 + $0x210] sm:$0xff]   ;;  %v1895_v41 = vld [vmem:[#allocation2 + $0x218] sm:$0xff]  }
  0x34   :  { %1700 = vmatprep.subr.bf16.mxu1 %v1849_v42  ;;  %v1897_v42 = vld [vmem:[#allocation2 + $0x260] sm:$0xff]  }
  0x35   :  { %1202 = vmatmul.mubr.bf16.vlgmr.msra.gmra.mrb[0].mxu0 %v122_v45  ;;  %v1899_v45 = vld [vmem:[#allocation2 + $0x220] sm:$0xff]  }
  0x36   :  { %1679 = vmatpush3.bf16.msra.mxu0 %v1850_v48  ;;  %1242 = vmatmul.mubr.bf16.vlgmr.msra.gmra.mrb[0].mxu1 %v124_v49  ;;  %v1902_v48 = vld [vmem:[#allocation2 + $0x2e8] sm:$0xff]  }
  0x37   :  { %1680 = vmatprep.subr.bf16.mxu0 %v1852_v50  ;;  %1701 = vmatpush3.bf16.msra.mxu1 %v1851_v52  ;;  %v1903_v49 = vld [vmem:[#allocation2 + $0x228] sm:$0xff]   ;;  %v1905_v50 = vld [vmem:[#allocation2 + $0x270] sm:$0xff]  }
  0x38   :  { %1702 = vmatprep.subr.bf16.mxu1 %v1853_v53  ;;  %1281 = vmatprep.mubr.bf16.mxu0 %v127_v24  ;;  %v1906_v52 = vld [vmem:[#allocation2 + $0x2f0] sm:$0xff]   ;;  %v1934_v24 = vld [vmem:[#allocation2 + $0x368] sm:$0xff]  }
  0x39   :  { %1321 = vmatprep.mubr.bf16.mxu1 %v129_v29  ;;  %v1907_v53 = vld [vmem:[#allocation2 + $0x230] sm:$0xff]   ;;  %v1937_v29 = vld [vmem:[#allocation2 + $0x3a8] sm:$0xff]  }
  0x3a   :  { %1681 = vmatpush3.bf16.msra.mxu0 %v1854_v54  ;;  %v1909_v54 = vld [vmem:[#allocation2 + $0x278] sm:$0xff]  }
  0x3b   :  { %1682 = vmatprep.subr.bf16.mxu0 %v1856_v55  ;;  %1703 = vmatpush3.bf16.msra.mxu1 %v1855_v56  ;;  %v1908_v55 = vld [vmem:[#allocation2 + $0x2b0] sm:$0xff]   ;;  %v1910_v56 = vld [vmem:[#allocation2 + $0x2f8] sm:$0xff]  }
  0x3c   :  { %1704 = vmatprep.subr.bf16.mxu1 %v1857_v57  ;;  %v32_v57 = vld [vmem:[%s2069_s0 + $0x10] sm:$0xff] }
  0x3e   :  { %1683 = vmatpush3.bf16.msra.mxu0 %v1858_v58  ;;  %v1911_v58 = vld [vmem:[#allocation2 + $0x238] sm:$0xff]  }
  0x3f   :  { %1684 = vmatprep.subr.bf16.mxu0 %v1860_v59  ;;  %1705 = vmatpush3.bf16.msra.mxu1 %v1859_v60  ;;  %v79_v59 = vrot.slane %v32_v57, %v2032_v35  ;;  %v72_v60 = vcombine.high %v32_v57, %v32_v57 }
  0x40   :  { %1706 = vmatprep.subr.bf16.mxu1 %v1861_v61  ;;  %v1914_v61 = vld [vmem:[#allocation2 + $0x340] sm:$0xff]  }
  0x42   :  { %1685 = vmatpush3.bf16.msra.mxu0 %v1862_v62  ;;  %v1912_v62 = vld [vmem:[#allocation2 + $0x2b8] sm:$0xff]  }
  0x43   :  { %1686 = vmatprep.subr.bf16.mxu0 %v1864_v63  ;;  %1707 = vmatpush3.bf16.msra.mxu1 %v1863_v0  ;;  %v87_v63 = vcombine.high %v79_v59, %v79_v59  ;;  %v86_v0 = vrot.slane %v72_v60, %v2032_v35 }
  0x44   :  { %1708 = vmatprep.subr.bf16.mxu1 %v1865_v1  ;;  %v130_v1 = vpack.c.bf16 %v79_v59, %v79_v59 }
  0x46   :  { %1687 = vmatpush3.bf16.msra.mxu0 %v1866_v2  ;;  %v1915_v2 = vld [vmem:[#allocation2 + $0x3c0] sm:$0xff]  }
  0x47   :  { %1688 = vmatprep.subr.bf16.mxu0 %v1868_v3  ;;  %1709 = vmatpush3.bf16.msra.mxu1 %v1867_v4  ;;  %v131_v3 = vpack.c.bf16 %v87_v63, %v87_v63  ;;  %v88_v4 = vcombine.high %v86_v0, %v86_v0 }
  0x48   :  { %1710 = vmatprep.subr.bf16.mxu1 %v1869_v5  ;;  %v1916_v5 = vld [vmem:[#allocation2 + $0x300] sm:$0xff]  }
  0x4a   :  { %1689 = vmatpush3.bf16.msra.mxu0 %v1870_v6  ;;  %v132_v6 = vpack.c.bf16 %v86_v0, %v86_v0 }
  0x4b   :  { %1690 = vmatprep.subr.bf16.mxu0 %v1872_v7  ;;  %1711 = vmatpush3.bf16.msra.mxu1 %v1871_v8  ;;  %v1918_v7 = vld [vmem:[#allocation2 + $0x348] sm:$0xff]   ;;  %v133_v8 = vpack.c.bf16 %v88_v4, %v88_v4 }
  0x4c   :  { %1712 = vmatprep.subr.bf16.mxu1 %v1873_v9  ;;  %v1917_v9 = vld [vmem:[#allocation2 + $0x380] sm:$0xff]  }
  0x4e   :  { %1691 = vmatpush3.bf16.msra.mxu0 %v1874_v10  ;;  %v1919_v10 = vld [vmem:[#allocation2 + $0x3c8] sm:$0xff]  }
  0x4f   :  { %1692 = vmatprep.subr.bf16.mxu0 %v1876_v11  ;;  %1713 = vmatpush3.bf16.msra.mxu1 %v1875_v12  ;;  %v1920_v11 = vld [vmem:[#allocation2 + $0x308] sm:$0xff]   ;;  %v1922_v12 = vld [vmem:[#allocation2 + $0x350] sm:$0xff]  }
  0x50   :  { %1714 = vmatprep.subr.bf16.mxu1 %v1877_v13  ;;  %v1921_v13 = vld [vmem:[#allocation2 + $0x388] sm:$0xff]  }
  0x52   :  { %1693 = vmatpush3.bf16.msra.mxu0 %v1878_v15  ;;  %v1924_v15 = vld [vmem:[#allocation2 + $0x310] sm:$0xff]  }
  0x53   :  { %1722 = vmatprep.subr.bf16.mxu0 %v1881_v18  ;;  %1715 = vmatpush3.bf16.msra.mxu1 %v1879_v19  ;;  %v1927_v18 = vld [vmem:[#allocation2 + $0x3d8] sm:$0xff]  }
  0x54   :  { %1744 = vmatprep.subr.bf16.mxu1 %v1882_v23  ;;  %v1928_v19 = vld [vmem:[#allocation2 + $0x318] sm:$0xff]   ;;  %v1932_v23 = vld [vmem:[#allocation2 + $0x320] sm:$0xff]  }
  0x55   :  { %1282 = vmatmul.mubr.bf16.vlgmr.msra.gmra.mrb[4].mxu0 %v126_v22  ;;  %v1931_v22 = vld [vmem:[#allocation2 + $0x3e0] sm:$0xff]  }
  0x56   :  { %1723 = vmatpush3.bf16.msra.mxu0 %v1883_v26  ;;  %1322 = vmatmul.mubr.bf16.vlgmr.msra.gmra.mrb[4].mxu1 %v128_v27  ;;  %v1935_v26 = vld [vmem:[#allocation2 + $0x3e8] sm:$0xff]  }
  0x57   :  { %1724 = vmatprep.subr.bf16.mxu0 %v1885_v28  ;;  %1745 = vmatpush3.bf16.msra.mxu1 %v1884_v30  ;;  %v1936_v27 = vld [vmem:[#allocation2 + $0x328] sm:$0xff]   ;;  %v1938_v28 = vld [vmem:[#allocation2 + $0x370] sm:$0xff]  }
  0x58   :  { %1746 = vmatprep.subr.bf16.mxu1 %v1886_v31  ;;  %1361 = vmatprep.mubr.bf16.mxu0 %v131_v3  ;;  %v1939_v30 = vld [vmem:[#allocation2 + $0x3f0] sm:$0xff]  }
  0x59   :  { %1401 = vmatprep.mubr.bf16.mxu1 %v133_v8  ;;  %v1940_v31 = vld [vmem:[#allocation2 + $0x330] sm:$0xff]  }
  0x5a   :  { %1725 = vmatpush3.bf16.msra.mxu0 %v1887_v32  ;;  %v1942_v32 = vld [vmem:[#allocation2 + $0x378] sm:$0xff]  }
  0x5b   :  { %1726 = vmatprep.subr.bf16.mxu0 %v1889_v33  ;;  %1747 = vmatpush3.bf16.msra.mxu1 %v1888_v34  ;;  %v1941_v33 = vld [vmem:[#allocation2 + $0x3b0] sm:$0xff]   ;;  %v1943_v34 = vld [vmem:[#allocation2 + $0x3f8] sm:$0xff]  }
  0x5c   :  { %1748 = vmatprep.subr.bf16.mxu1 %v1890_v36  ;;  %v1944_v36 = vld [vmem:[#allocation2 + $0x338] sm:$0xff]  }
  0x5e   :  { %1727 = vmatpush3.bf16.msra.mxu0 %v1891_v37  ;;  %v33_v37 = vld [vmem:[%s2069_s0 + $0x18] sm:$0xff] }
  0x5f   :  { %1728 = vmatprep.subr.bf16.mxu0 %v1893_v38  ;;  %1749 = vmatpush3.bf16.msra.mxu1 %v1892_v39  ;;  %v96_v38 = vrot.slane %v33_v37, %v2032_v35  ;;  %v89_v39 = vcombine.high %v33_v37, %v33_v37 }
  0x60   :  { %1750 = vmatprep.subr.bf16.mxu1 %v1894_v40  ;;  %v1945_v40 = vld [vmem:[#allocation2 + $0x3b8] sm:$0xff]  }
  0x62   :  { %1729 = vmatpush3.bf16.msra.mxu0 %v1895_v41  ;;  %v104_v41 = vcombine.high %v96_v38, %v96_v38 }
  0x63   :  { %1730 = vmatprep.subr.bf16.mxu0 %v1897_v42  ;;  %1751 = vmatpush3.bf16.msra.mxu1 %v1896_v43  ;;  %v103_v42 = vrot.slane %v89_v39, %v2032_v35  ;;  %v134_v43 = vpack.c.bf16 %v96_v38, %v96_v38 }
  0x64   :  { %1752 = vmatprep.subr.bf16.mxu1 %v1898_v44  ;;  %v135_v44 = vpack.c.bf16 %v104_v41, %v104_v41 }
  0x66   :  { %1731 = vmatpush3.bf16.msra.mxu0 %v1899_v45  ;;  %v105_v45 = vcombine.high %v103_v42, %v103_v42 }
  0x67   :  { %1732 = vmatprep.subr.bf16.mxu0 %v1901_v46  ;;  %1753 = vmatpush3.bf16.msra.mxu1 %v1900_v47  ;;  %v136_v46 = vpack.c.bf16 %v103_v42, %v103_v42 }
  0x68   :  { %1754 = vmatprep.subr.bf16.mxu1 %v1902_v48  ;;  %v137_v47 = vpack.c.bf16 %v105_v45, %v105_v45 }
  0x6a   :  { %1733 = vmatpush3.bf16.msra.mxu0 %v1903_v49  ;;  %v1505_v49 = vld [vmem:[%s2071_s2] ss:$0 sm:$0xff]  ;;  %s1999_s2 = smov [#allocation5]  }
  0x6b   :  { %1734 = vmatprep.subr.bf16.mxu0 %v1905_v50  ;;  %1755 = vmatpush3.bf16.msra.mxu1 %v1904_v51  ;;  %s1496_s7 = sshll.u32 %s1999_s2, 4  ;;  %s1497_s7 = int_to_ptr.vmem [resolvable:$true] %s1496_s7 }
  0x6c   :  { %1756 = vmatprep.subr.bf16.mxu1 %v1906_v52  ;;  %s1969_s8 = scalar_lea.vmem %s1497_s7, 32  ;;  %p1974_p9 = scmp.lt.s32.totalorder %s1497_s7, %s1497_s7 }
  0x6d   :  { %p1970_p8 = scmp.ne.s32.totalorder %s1497_s7, %s1969_s8  ;;  %p1975_p10 = scmp.lt.s32.totalorder %s1969_s8, %s1969_s8 }
  0x6e   :  { %1735 = vmatpush3.bf16.msra.mxu0 %v1907_v53 }
  0x6f   :  { %1736 = vmatprep.subr.bf16.mxu0 %v1909_v54  ;;  %1757 = vmatpush3.bf16.msra.mxu1 %v1908_v55  ;;  %p1976_p11 = por %p1975_p10, %p1974_p9 }
  0x70   :  { %1758 = vmatprep.subr.bf16.mxu1 %v1910_v56 }
  0x71   :  { %p1977_p12 = pnand %p1976_p11, %p1970_p8 }
  0x72   :  { %1737 = vmatpush3.bf16.msra.mxu0 %v1911_v58 }
  0x73   :  { %1766 = vmatprep.subr.bf16.mxu0 %v1914_v61  ;;  %1759 = vmatpush3.bf16.msra.mxu1 %v1912_v62 }
  0x74   :  { %1788 = vmatprep.subr.bf16.mxu1 %v1915_v2 }
  0x75   :  { %1362 = vmatmul.mubr.bf16.vlgmr.msra.gmra.mrb[8].mxu0 %v130_v1 }
  0x76   :  { %1767 = vmatpush3.bf16.msra.mxu0 %v1916_v5  ;;  %1402 = vmatmul.mubr.bf16.vlgmr.msra.gmra.mrb[8].mxu1 %v132_v6 }
  0x77   :  { %1768 = vmatprep.subr.bf16.mxu0 %v1918_v7  ;;  %1789 = vmatpush3.bf16.msra.mxu1 %v1917_v9 }
  0x78   :  { %1790 = vmatprep.subr.bf16.mxu1 %v1919_v10  ;;  %1441 = vmatprep.mubr.bf16.mxu0 %v135_v44 }
  0x79   :  { %1481 = vmatprep.mubr.bf16.mxu1 %v137_v47 }
  0x7a   :  { %1769 = vmatpush3.bf16.msra.mxu0 %v1920_v11 }
  0x7b   :  { %1770 = vmatprep.subr.bf16.mxu0 %v1922_v12  ;;  %1791 = vmatpush3.bf16.msra.mxu1 %v1921_v13 }
  0x7c   :  { %1792 = vmatprep.subr.bf16.mxu1 %v1923_v14 }
  0x7e   :  { %1771 = vmatpush3.bf16.msra.mxu0 %v1924_v15 }
  0x7f   :  { %1772 = vmatprep.subr.bf16.mxu0 %v1926_v16  ;;  %1793 = vmatpush3.bf16.msra.mxu1 %v1925_v17 }
  0x80   :  { %1794 = vmatprep.subr.bf16.mxu1 %v1927_v18 }
  0x82   :  { %1773 = vmatpush3.bf16.msra.mxu0 %v1928_v19 }
  0x83   :  { %1774 = vmatprep.subr.bf16.mxu0 %v1930_v20  ;;  %1795 = vmatpush3.bf16.msra.mxu1 %v1929_v21 }
  0x84   :  { %1796 = vmatprep.subr.bf16.mxu1 %v1931_v22 }
  0x86   :  { %1775 = vmatpush3.bf16.msra.mxu0 %v1932_v23 }
  0x87   :  { %1776 = vmatprep.subr.bf16.mxu0 %v1934_v24  ;;  %1797 = vmatpush3.bf16.msra.mxu1 %v1933_v25 }
  0x88   :  { %1798 = vmatprep.subr.bf16.mxu1 %v1935_v26 }
  0x8a   :  { %1777 = vmatpush3.bf16.msra.mxu0 %v1936_v27 }
  0x8b   :  { %1778 = vmatprep.subr.bf16.mxu0 %v1938_v28  ;;  %1799 = vmatpush3.bf16.msra.mxu1 %v1937_v29 }
  0x8c   :  { %1800 = vmatprep.subr.bf16.mxu1 %v1939_v30 }
  0x8e   :  { %1779 = vmatpush3.bf16.msra.mxu0 %v1940_v31 }
  0x8f   :  { %1780 = vmatprep.subr.bf16.mxu0 %v1942_v32  ;;  %1801 = vmatpush3.bf16.msra.mxu1 %v1941_v33 }
  0x90   :  { %1802 = vmatprep.subr.bf16.mxu1 %v1943_v34 }
  0x92   :  { %1781 = vmatpush3.bf16.msra.mxu0 %v1944_v36 }
  0x93   :  { %1803 = vmatpush3.bf16.msra.mxu1 %v1945_v40 }
  0x95   :  { %1442 = vmatmul.mubr.bf16.vlgmr.msra.gmra.mrb[12].mxu0 %v134_v43 }
  0x96   :  { %1482 = vmatmul.mubr.bf16.vlgmr.msra.gmra.mrb[12].mxu1 %v136_v46 }
 0x108   :  { %v1650_v48 = vpop.f32.mrb[0].mxu0 }
 0x109   :  { %v1651_v50 = vpop.f32.mrb[1].mxu0  ;;  %v1672_v51 = vpop.f32.mrb[0].mxu1 }
 0x10a   :  { %v1652_v52 = vadd.f32 %v1651_v50, %v1650_v48  ;;  %v1653_v35 = vpop.f32.mrb[2].mxu0  ;;  %v1673_v53 = vpop.f32.mrb[1].mxu1 }
 0x10b   :  { %v1654_v54 = vpop.f32.mrb[3].mxu0  ;;  %v1674_v56 = vadd.f32 %v1673_v53, %v1672_v51  ;;  %v1675_v57 = vpop.f32.mrb[2].mxu1 }
 0x10c   :  { %v1204_v55 = vadd.f32 %v1652_v52, %v1505_v49  ;;  %v1676_v58 = vpop.f32.mrb[3].mxu1 }
 0x10e   :  { %v1244_v59 = vadd.f32 %v1674_v56, %v1204_v55 }
 0x128   :  { %v1694_v60 = vpop.f32.mrb[4].mxu0 }
 0x129   :  { %v1695_v61 = vpop.f32.mrb[5].mxu0  ;;  %v1716_v62 = vpop.f32.mrb[4].mxu1 }
 0x12a   :  { %v1696_v63 = vadd.f32 %v1695_v61, %v1694_v60  ;;  %v1697_v0 = vpop.f32.mrb[6].mxu0  ;;  %v1717_v1 = vpop.f32.mrb[5].mxu1 }
 0x12b   :  { %v1698_v2 = vpop.f32.mrb[7].mxu0  ;;  %v1718_v4 = vadd.f32 %v1717_v1, %v1716_v62  ;;  %v1719_v5 = vpop.f32.mrb[6].mxu1 }
 0x12c   :  { %v1284_v3 = vadd.f32 %v1696_v63, %v1244_v59  ;;  %v1720_v6 = vpop.f32.mrb[7].mxu1 }
 0x12e   :  { %v1324_v7 = vadd.f32 %v1718_v4, %v1284_v3 }
 0x148   :  { %v1738_v8 = vpop.f32.mrb[8].mxu0 }
 0x149   :  { %v1739_v9 = vpop.f32.mrb[9].mxu0  ;;  %v1760_v10 = vpop.f32.mrb[8].mxu1 }
 0x14a   :  { %v1740_v11 = vadd.f32 %v1739_v9, %v1738_v8  ;;  %v1741_v12 = vpop.f32.mrb[10].mxu0  ;;  %v1761_v13 = vpop.f32.mrb[9].mxu1 }
 0x14b   :  { %v1742_v14 = vpop.f32.mrb[11].mxu0  ;;  %v1762_v16 = vadd.f32 %v1761_v13, %v1760_v10  ;;  %v1763_v17 = vpop.f32.mrb[10].mxu1 }
 0x14c   :  { %v1364_v15 = vadd.f32 %v1740_v11, %v1324_v7  ;;  %v1764_v18 = vpop.f32.mrb[11].mxu1 }
 0x14e   :  { %v1404_v19 = vadd.f32 %v1762_v16, %v1364_v15 }
 0x168   :  { %v1782_v20 = vpop.f32.mrb[12].mxu0 }
 0x169   :  { %v1783_v21 = vpop.f32.mrb[13].mxu0  ;;  %v1804_v22 = vpop.f32.mrb[12].mxu1 }
 0x16a   :  { %v1784_v23 = vadd.f32 %v1783_v21, %v1782_v20  ;;  %v1785_v24 = vpop.f32.mrb[14].mxu0  ;;  %v1805_v25 = vpop.f32.mrb[13].mxu1 }
 0x16b   :  { %v1786_v26 = vpop.f32.mrb[15].mxu0  ;;  %v1806_v28 = vadd.f32 %v1805_v25, %v1804_v22  ;;  %v1807_v29 = vpop.f32.mrb[14].mxu1 }
 0x16c   :  { %v1444_v27 = vadd.f32 %v1784_v23, %v1404_v19  ;;  %v1808_v30 = vpop.f32.mrb[15].mxu1 }
 0x16e   :  { %v1484_v31 = vadd.f32 %v1806_v28, %v1444_v27 }
 0x170   :  { %1489 = vst [vmem:[#allocation5] sm:$0x3] %v1484_v31 }
 0x171   :  { %1980 = shalt.err (!%p1977_p12)
}
 0x172   :  { %s1981_s11 = scalar_lea.hbm %s2072_s3, 32 }
 0x173   :  { %p1982_p13 = scmp.ne.s32.totalorder %s2072_s3, %s1981_s11  ;;  %p1985_p0 = scmp.lt.u32.totalorder %s1981_s11, %s2072_s3 }
 0x175   :  { %p1987_p1 = pnand %p1985_p0, %p1982_p13 }
 0x177   :  { %1990 = shalt.err (!%p1987_p1)
}
 0x178   :  { %1499 = dma.vmem_to_hbm [thread:$0]  %s1497_s7, 32, %s2072_s3, [#allocation4]  }
 0x179   :  { %1993 = dma.done.wait [#allocation4], 32  }
 0x17a   :  { %1994 = vsyncadd [#allocation4], 4294967264 }
 0x17b   :  { %1503 = vsyncpa [#allocation3], 1 }
 0x17c   :  { %1504 = vsyncpa [#allocation4], 1 }

</bundles_post_ra>
